<compile_context>
chip_gen: v7x
topology: tpu7x:2x2x1
jax: 0.10.0
libtpu: 0.0.40
codegen_flags: <defaults>
</compile_context>

<pallas_src>
import jax
import jax.numpy as jnp
from jax.experimental import pallas as pl
from jax.experimental.pallas import tpu as pltpu

Dim_capsule = 16
Num_capsule = 10
num_classes = 30
IN_FEATURES = Num_capsule * Dim_capsule  # 160

DEFAULT_TILE_B = 4096  # ~13 MiB padded, double-buffered -> fits v5e's 16 MiB scoped VMEM


def _round_up(v, m):
    return ((v + m - 1) // m) * m


def _dense_sigmoid_kernel(x_ref, w_ref, b_ref, o_ref):
    # x_ref: (TILE_B, 160), w_ref: (160, 30), b_ref: (30, 1), o_ref: (30, TILE_B)
    # Transposed matmul so the result is lane-dense (batch on the 128-lane axis).
    acc = jax.lax.dot_general(
        w_ref[...], x_ref[...],
        dimension_numbers=(((0,), (1,)), ((), ())),     # contract K = 160
        preferred_element_type=jnp.float32,
        precision=jax.lax.Precision.HIGHEST,            # free: kernel is HBM-bound
    )                                                   # (num_classes, TILE_B) f32 on MXU
    acc = acc + b_ref[...]                              # (30,1) broadcast over batch lanes (VPU)
    o_ref[...] = jax.nn.sigmoid(acc).astype(o_ref.dtype)


def dense_layer_forward(x, w, b, *, tile_b=DEFAULT_TILE_B):
    """x: (B, Num_capsule, Dim_capsule). Returns (B, num_classes) float32."""
    batch = x.shape[0]
    x_flat = x.reshape(batch, -1)            # == torch x.view(batch, -1)
    b_col = b.reshape(num_classes, 1)        # bias as a column for the transposed layout

    if batch <= tile_b:
        tile_b = batch                       # single full-extent block (no 128 constraint)
    else:
        # Output block's lane dim is tile_b -> must be a multiple of 128 when tiling.
        tile_b = max(128, (tile_b // 128) * 128)

    grid = (pl.cdiv(batch, tile_b),)         # ragged last block OK: rows are independent,
                                             # out-of-bounds columns masked on writeback.

    # Real (8,128)-padded, double-buffered VMEM footprint (explicit, per review).
    x_itemsize = jnp.dtype(x_flat.dtype).itemsize
    w_itemsize = jnp.dtype(w.dtype).itemsize
    x_tile_bytes = tile_b * _round_up(IN_FEATURES, 128) * x_itemsize            # 160 -> 256 lanes
    o_tile_bytes = _round_up(num_classes, 8) * tile_b * 4                       # 30 -> 32 sublanes
    w_bytes = _round_up(IN_FEATURES, 8) * _round_up(num_classes, 128) * w_itemsize
    b_bytes = _round_up(num_classes, 8) * 128 * 4
    vmem_limit = int(2 * (x_tile_bytes + o_tile_bytes + w_bytes + b_bytes) + (4 << 20))

    cost = pl.CostEstimate(
        flops=2 * batch * IN_FEATURES * num_classes,
        transcendentals=batch * num_classes,  # one exp per output element (sigmoid)
        bytes_accessed=(batch * IN_FEATURES * x_itemsize
                        + IN_FEATURES * num_classes * w_itemsize
                        + num_classes * 4
                        + batch * num_classes * 4),
    )

    out_t = pl.pallas_call(
        _dense_sigmoid_kernel,
        out_shape=jax.ShapeDtypeStruct((num_classes, batch), jnp.float32),
        grid_spec=pltpu.PrefetchScalarGridSpec(
            num_scalar_prefetch=0,
            grid=grid,
            in_specs=[
                pl.BlockSpec((tile_b, IN_FEATURES), lambda i: (i, 0)),       # streamed x
                pl.BlockSpec((IN_FEATURES, num_classes), lambda i: (0, 0)),  # resident w
                pl.BlockSpec((num_classes, 1), lambda i: (0, 0)),            # resident b
            ],
            out_specs=pl.BlockSpec((num_classes, tile_b), lambda i: (0, i)),  # lane-dense
        ),
        compiler_params=pltpu.CompilerParams(
            dimension_semantics=("parallel",),   # batch tiles independent (v7x megacore)
            vmem_limit_bytes=vmem_limit,
        ),
        cost_estimate=cost,
    )(x_flat, w, b_col)

    return out_t.T  # back to (batch, num_classes); cheap XLA transpose outside the kernel


def init_params(key):
    """Deterministic init mimicking nn.Linear default: U(-1/sqrt(in), 1/sqrt(in))."""
    kw, kb = jax.random.split(key)
    bound = 1.0 / jnp.sqrt(jnp.float32(IN_FEATURES))
    # Stored directly in (in, out) layout for the kernel.
    w = jax.random.uniform(
        kw, (IN_FEATURES, num_classes), jnp.float32, minval=-bound, maxval=bound
    )
    b = jax.random.uniform(
        kb, (num_classes,), jnp.float32, minval=-bound, maxval=bound
    )
    return w, b


def _reference(x, w, b):
    # Eval-mode dropout == identity. HIGHEST precision to match the kernel's f32 MXU path.
    acc = jnp.dot(x.reshape(x.shape[0], -1), w, precision=jax.lax.Precision.HIGHEST)
    return jax.nn.sigmoid(acc + b)


if __name__ == "__main__":
    key = jax.random.PRNGKey(0)
    k_x, k_x2, k_x3, k_p = jax.random.split(key, 4)
    w, b = init_params(k_p)

    # 1) Tiny batch (matches the module spec example): single full-extent block.
    batch = 2
    x = jax.random.normal(k_x, (batch, Num_capsule, Dim_capsule), jnp.float32)
    out = jax.block_until_ready(dense_layer_forward(x, w, b))
    assert out.shape == (batch, num_classes)
    assert jnp.allclose(out, _reference(x, w, b), atol=1e-5, rtol=1e-5)

    # 2) Larger batch with a small tile: multi-block double-buffered streaming
    #    path with lane-dense (30, 128) output blocks (same code path as
    #    TILE_B=4096 at scale).
    batch2 = 384
    x2 = jax.random.normal(k_x2, (batch2, Num_capsule, Dim_capsule), jnp.float32)
    out2 = jax.block_until_ready(dense_layer_forward(x2, w, b, tile_b=128))
    assert out2.shape == (batch2, num_classes)
    assert jnp.allclose(out2, _reference(x2, w, b), atol=1e-5, rtol=1e-5)

    # 3) Ragged last block (batch not a multiple of tile_b): out-of-bounds
    #    columns are masked on writeback; pad rows of x only feed pad columns.
    batch3 = 200
    x3 = jax.random.normal(k_x3, (batch3, Num_capsule, Dim_capsule), jnp.float32)
    out3 = jax.block_until_ready(dense_layer_forward(x3, w, b, tile_b=128))
    assert out3.shape == (batch3, num_classes)
    assert jnp.allclose(out3, _reference(x3, w, b), atol=1e-5, rtol=1e-5)

    print("KERNEL_OK")
</pallas_src>

<mosaic_0001>
module attributes {stable_mosaic.version = 11 : i64} {
  func.func @_dense_sigmoid_kernel(%arg0: i32, %arg1: memref<2x160xf32, #tpu.memory_space<vmem>>, %arg2: memref<160x30xf32, #tpu.memory_space<vmem>>, %arg3: memref<30x1xf32, #tpu.memory_space<vmem>>, %arg4: memref<30x2xf32, #tpu.memory_space<vmem>>) attributes {dimension_semantics = [#tpu.dimension_semantics<parallel>], iteration_bounds = array<i64: 1>, scalar_prefetch = 0 : i64, scratch_operands = 0 : i64, tpu.core_type = #tpu.core_type<tc>, window_params = [{transform_indices = @transform_0, window_bounds = array<i64: 2, 160>}, {pipeline_mode = #tpu.pipeline_mode<synchronous>, transform_indices = @transform_1, window_bounds = array<i64: 160, 30>}, {pipeline_mode = #tpu.pipeline_mode<synchronous>, transform_indices = @transform_2, window_bounds = array<i64: 30, 1>}, {transform_indices = @transform_3, window_bounds = array<i64: 30, 2>}]} {
    %c0 = arith.constant 0 : index
    %c0_0 = arith.constant 0 : index
    %0 = vector.load %arg2[%c0, %c0_0] : memref<160x30xf32, #tpu.memory_space<vmem>>, vector<160x30xf32>
    %c0_1 = arith.constant 0 : index
    %c0_2 = arith.constant 0 : index
    %1 = vector.load %arg1[%c0_1, %c0_2] : memref<2x160xf32, #tpu.memory_space<vmem>>, vector<2x160xf32>
    %cst = arith.constant dense<0.000000e+00> : vector<30x2xf32>
    %2 = tpu.matmul %0, %1, %cst {dimension_numbers = #tpu.dot_dimension_numbers<[0], [1], [1], [0], [0, 1, 1, 0], [], []>, precision = #tpu.contract_precision<fp32>} : vector<160x30xf32>, vector<2x160xf32>, vector<30x2xf32> -> vector<30x2xf32>
    %c0_3 = arith.constant 0 : index
    %c0_4 = arith.constant 0 : index
    %3 = vector.load %arg3[%c0_3, %c0_4] : memref<30x1xf32, #tpu.memory_space<vmem>>, vector<30x1xf32>
    %4 = vector.broadcast %3 : vector<30x1xf32> to vector<30x2xf32>
    %5 = arith.addf %2, %4 : vector<30x2xf32>
    %6 = arith.negf %5 : vector<30x2xf32>
    %7 = math.exp %6 : vector<30x2xf32>
    %cst_5 = arith.constant 1.000000e+00 : f32
    %8 = vector.broadcast %cst_5 : f32 to vector<30x2xf32>
    %9 = arith.addf %8, %7 : vector<30x2xf32>
    %10 = arith.divf %8, %9 : vector<30x2xf32>
    %c0_6 = arith.constant 0 : index
    %c0_7 = arith.constant 0 : index
    %11 = vector.load %arg4[%c0_6, %c0_7] : memref<30x2xf32, #tpu.memory_space<vmem>>, vector<30x2xf32>
    tpu.vector_store %arg4[%c0_6, %c0_7], %10 {strides = array<i32>} : memref<30x2xf32, #tpu.memory_space<vmem>>, vector<30x2xf32>,
    return
  }
  func.func @transform_0(%arg0: i32) -> (i32, i32) {
    %c0_i32 = arith.constant 0 : i32
    %c0_i32_0 = arith.constant 0 : i32
    return %arg0, %c0_i32 : i32, i32
  }
  func.func @transform_1(%arg0: i32) -> (i32, i32) {
    %c0_i32 = arith.constant 0 : i32
    %c0_i32_0 = arith.constant 0 : i32
    %c0_i32_1 = arith.constant 0 : i32
    return %c0_i32, %c0_i32_0 : i32, i32
  }
  func.func @transform_2(%arg0: i32) -> (i32, i32) {
    %c0_i32 = arith.constant 0 : i32
    %c0_i32_0 = arith.constant 0 : i32
    %c0_i32_1 = arith.constant 0 : i32
    return %c0_i32, %c0_i32_0 : i32, i32
  }
  func.func @transform_3(%arg0: i32) -> (i32, i32) {
    %c0_i32 = arith.constant 0 : i32
    %c0_i32_0 = arith.constant 0 : i32
    return %c0_i32, %arg0 : i32, i32
  }
}

</mosaic_0001>

<bundles_post_ra>
// kernel: tpu_custom_call.1
= control target key start
LH: loop header
LB: loop body
LE: loop exit
PB: predicated region body
PF: predicated region fallthrough
CT: control target
= control target key end

     0   :  { %vm133_vm0 = vcmask 261120   ;;  %v887_v29 = vmov 0   ;;  %vm812_vm1 = vcmask 15360   ;;  %vm816_vm2 = vcmask 13312   ;;  %s1088_s1 = inlined_call_operand.vmem [shape: f32[160,30], index: 1, kind: input, shape index: {}]   ;;  %s1089_s0 = inlined_call_operand.vmem [shape: f32[2,160], index: 0, kind: input, shape index: {}]   ;;  %s1090_s2 = inlined_call_operand.vmem [shape: f32[30,1], index: 2, kind: input, shape index: {}]   ;;  %s1091_s3 = inlined_call_operand.vmem [shape: f32[30,2], index: 3, kind: output, shape index: {}]  }
   0x1   :  { %v30_v0 = vld [vmem:[%s1088_s1 + $0x80] sm:$0xff]  ;;  %v31_v2 = vld [vmem:[%s1088_s1 + $0x88] sm:$0xff]  ;;  %v32_v4 = vld [vmem:[%s1088_s1 + $0x90] sm:$0xff] }
   0x2   :  { %v14_v1 = vld [vmem:[%s1088_s1] sm:$0xff]  ;;  %91 = vxpose.xlu0.b32.start [1/4] (short) (narrow) %v30_v0, 32  ;;  %v15_v3 = vld [vmem:[%s1088_s1 + $0x8] sm:$0xff]  ;;  %v16_v5 = vld [vmem:[%s1088_s1 + $0x10] sm:$0xff] }
   0x3   :  { %59 = vxpose.xlu1.b32.start [1/16] (narrow) %v14_v1, 32  ;;  %v822_v6 = vld.sshfl [vmem:[%s1089_s0] sm:$0x33 pattern:$0x76325410]  ;;  %v33_v9 = vld [vmem:[%s1088_s1 + $0x98] sm:$0xff] }
   0x4   :  { %v131_v7 = vcombine.high %v822_v6, %v822_v6  ;;  %v17_v10 = vld [vmem:[%s1088_s1 + $0x18] sm:$0xff]  ;;  %v938_v12 = vand.u32 4294901760, %v822_v6  ;;  %v18_v13 = vld [vmem:[%s1088_s1 + $0x20] sm:$0xff]  ;;  %v19_v15 = vld [vmem:[%s1088_s1 + $0x28] sm:$0xff] }
   0x5   :  { %v20_v18 = vld [vmem:[%s1088_s1 + $0x30] sm:$0xff]  ;;  %v21_v20 = vld [vmem:[%s1088_s1 + $0x38] sm:$0xff]  ;;  %v22_v21 = vld [vmem:[%s1088_s1 + $0x40] sm:$0xff] }
   0x6   :  { %92 = vxpose.xlu0.b32.cont [2/4] (short) (narrow) %v31_v2, 32  ;;  %v146_v8 = vsel %vm133_vm0, %v131_v7, 0  ;;  %v23_v22 = vld [vmem:[%s1088_s1 + $0x48] sm:$0xff]  ;;  %v24_v23 = vld [vmem:[%s1088_s1 + $0x50] sm:$0xff]  ;;  %v25_v24 = vld [vmem:[%s1088_s1 + $0x58] sm:$0xff]  ;;  %v998_v34 = vsub.f32 %v822_v6, %v938_v12 }
   0x7   :  { %60 = vxpose.xlu1.b32.cont [2/16] (narrow) %v15_v3, 32  ;;  %v936_v11 = vand.u32 4294901760, %v146_v8  ;;  %v26_v25 = vld [vmem:[%s1088_s1 + $0x60] sm:$0xff]  ;;  %v27_v26 = vld [vmem:[%s1088_s1 + $0x68] sm:$0xff]  ;;  %v28_v27 = vld [vmem:[%s1088_s1 + $0x70] sm:$0xff] }
   0x8   :  { %v29_v28 = vld [vmem:[%s1088_s1 + $0x78] sm:$0xff]  ;;  %v35_v30 = vld [vmem:[%s1090_s2] sm:$0xff]  ;;  %v36_v31 = vld [vmem:[%s1090_s2 + $0x8] sm:$0xff]  ;;  %v283_v40 = vand.u32 4294901760, %v998_v34 }
   0x9   :  { %484 = vmatprep.subr.mxu0 %v936_v11  ;;  %149 = vmatprep.subr.mxu1 %v936_v11  ;;  %v948_v14 = vsub.f32 %v146_v8, %v936_v11  ;;  %v37_v32 = vld [vmem:[%s1090_s2 + $0x10] sm:$0xff]  ;;  %v38_v33 = vld [vmem:[%s1090_s2 + $0x18] sm:$0x3f] }
   0xa   :  { %93 = vxpose.xlu0.b32.cont [3/4] (short) (narrow) %v32_v4, 32  ;;  %486 = vmatpush1.xpose.msra.mxu0 %v938_v12  ;;  %v284_v50 = vsub.f32 %v998_v34, %v283_v40 }
   0xb   :  { %61 = vxpose.xlu1.b32.cont [3/16] (narrow) %v16_v5, 32  ;;  %151 = vmatpush1.xpose.msra.mxu1 %v938_v12  ;;  %v277_v16 = vand.u32 4294901760, %v948_v14 }
   0xc   :  { %v285_v63 = vand.u32 4294901760, %v284_v50 }
   0xd   :  { %v278_v17 = vsub.f32 %v948_v14, %v277_v16  ;;  %597 = vmatprep.subr.mxu0 %v277_v16 }
   0xe   :  { %94 = vxpose.xlu0.b32.end [4/4] (short) (narrow) %v33_v9, 32 }
   0xf   :  { %62 = vxpose.xlu1.b32.cont [4/16] (narrow) %v17_v10, 32  ;;  %v279_v19 = vand.u32 4294901760, %v278_v17 }
  0x11   :  { %280 = vmatprep.subr.mxu1 %v279_v19 }
  0x13   :  { %63 = vxpose.xlu1.b32.cont [5/16] (narrow) %v18_v13, 32 }
  0x17   :  { %64 = vxpose.xlu1.b32.cont [6/16] (narrow) %v19_v15, 32 }
  0x1b   :  { %65 = vxpose.xlu1.b32.cont [7/16] (narrow) %v20_v18, 32 }
  0x1f   :  { %66 = vxpose.xlu1.b32.cont [8/16] (narrow) %v21_v20, 32 }
  0x23   :  { %67 = vxpose.xlu1.b32.cont [9/16] (narrow) %v22_v21, 32 }
  0x27   :  { %68 = vxpose.xlu1.b32.cont [10/16] (narrow) %v23_v22, 32 }
  0x2b   :  { %69 = vxpose.xlu1.b32.cont [11/16] (narrow) %v24_v23, 32 }
  0x2f   :  { %70 = vxpose.xlu1.b32.cont [12/16] (narrow) %v25_v24, 32 }
  0x33   :  { %71 = vxpose.xlu1.b32.cont [13/16] (narrow) %v26_v25, 32 }
  0x37   :  { %72 = vxpose.xlu1.b32.cont [14/16] (narrow) %v27_v26, 32  ;;  %869 = vset.pattern.permute.xlu0 %v887_v29 }
  0x38   :  { %41 = vperm.xlu0 %869, %v35_v30  }
  0x3b   :  { %73 = vxpose.xlu1.b32.cont [15/16] (narrow) %v28_v27, 32 }
  0x3c   :  { %46 = vperm.xlu0 %869, %v36_v31  }
  0x3f   :  { %74 = vxpose.xlu1.b32.end [16/16] (narrow) %v29_v28, 32 }
  0x40   :  { %51 = vperm.xlu0 %869, %v37_v32  }
  0x5d   :  { %870 = vset.pattern.permute.xlu1 %v887_v29 }
  0x5e   :  { %56 = vperm.xlu1 %870, %v38_v33  }
  0x82   :  { %v107_v35 = vpop.trf.xlu0 }
  0x83   :  { %v75_v36 = vpop.trf.xlu1  ;;  %v135_v37 = vsel %vm133_vm0, %v107_v35, 0 }
  0x84   :  { %v1001_v38 = vand.u32 4294901760, %v75_v36  ;;  %v1003_v39 = vand.u32 4294901760, %v135_v37 }
  0x86   :  { %v1007_v41 = vsub.f32 %v75_v36, %v1001_v38  ;;  %v1010_v42 = vsub.f32 %v135_v37, %v1003_v39  ;;  %v108_v43 = vpop.trf.xlu0 }
  0x87   :  { %v76_v44 = vpop.trf.xlu1  ;;  %v138_v45 = vsel %vm133_vm0, %v108_v43, 0 }
  0x88   :  { %v1013_v46 = vand.u32 4294901760, %v76_v44  ;;  %v222_v47 = vand.u32 4294901760, %v1007_v41  ;;  %v1016_v48 = vand.u32 4294901760, %v138_v45  ;;  %v216_v49 = vand.u32 4294901760, %v1010_v42 }
  0x8a   :  { %v1021_v51 = vsub.f32 %v76_v44, %v1013_v46  ;;  %v223_v52 = vsub.f32 %v1007_v41, %v222_v47  ;;  %v1025_v53 = vsub.f32 %v138_v45, %v1016_v48  ;;  %552 = vmatprep.mubr.f32.mxu0 %v216_v49  ;;  %v109_v54 = vpop.trf.xlu0  ;;  %v217_v56 = vsub.f32 %v1010_v42, %v216_v49 }
  0x8b   :  { %v77_v55 = vpop.trf.xlu1  ;;  %v141_v57 = vsel %vm133_vm0, %v109_v54, 0  ;;  %556 = vmatmul.mubr.f32.vlgmr.msra.gmra.mrb[0].mxu0 %v222_v47 }
  0x8c   :  { %v1029_v58 = vand.u32 4294901760, %v77_v55  ;;  %v237_v59 = vand.u32 4294901760, %v1021_v51  ;;  %v1032_v60 = vand.u32 4294901760, %v141_v57  ;;  %v218_v61 = vand.u32 4294901760, %v217_v56  ;;  %601 = vmatpush1.xpose.msra.mxu0 %v283_v40 }
  0x8d   :  { %v231_v62 = vand.u32 4294901760, %v1025_v53  ;;  %v224_v1 = vand.u32 4294901760, %v223_v52  ;;  %694 = vmatprep.subr.mxu0 %v936_v11 }
  0x8e   :  { %v1036_v0 = vsub.f32 %v77_v55, %v1029_v58  ;;  %v238_v2 = vsub.f32 %v1021_v51, %v237_v59  ;;  %v1041_v3 = vsub.f32 %v141_v57, %v1032_v60  ;;  %219 = vmatprep.mubr.f32.mxu1 %v218_v61  ;;  %v110_v4 = vpop.trf.xlu0 }
  0x8f   :  { %v78_v5 = vpop.trf.xlu1  ;;  %563 = vmatprep.mubr.f32.mxu0 %v231_v62  ;;  %v232_v6 = vsub.f32 %v1025_v53, %v231_v62  ;;  %v144_v7 = vsel %vm133_vm0, %v110_v4, 0  ;;  %225 = vmatmul.mubr.f32.vlgmr.msra.gmra.mrb[0].mxu1 %v224_v1 }
  0x90   :  { %v265_v8 = vand.u32 4294901760, %v78_v5  ;;  %567 = vmatmul.mubr.f32.gmra.mrb[2].mxu0 %v237_v59  ;;  %v252_v9 = vand.u32 4294901760, %v1036_v0  ;;  %v259_v10 = vand.u32 4294901760, %v144_v7  ;;  %286 = vmatpush1.xpose.msra.mxu1 %v285_v63  ;;  %v246_v11 = vand.u32 4294901760, %v1041_v3 }
  0x91   :  { %v233_v13 = vand.u32 4294901760, %v232_v6  ;;  %v239_v16 = vand.u32 4294901760, %v238_v2  ;;  %380 = vmatprep.subr.mxu1 %v948_v14 }
  0x92   :  { %v266_v15 = vsub.f32 %v78_v5, %v265_v8  ;;  %v253_v17 = vsub.f32 %v1036_v0, %v252_v9  ;;  %v260_v18 = vsub.f32 %v144_v7, %v259_v10  ;;  %574 = vmatprep.mubr.f32.mxu0 %v246_v11  ;;  %v247_v19 = vsub.f32 %v1041_v3, %v246_v11 }
  0x93   :  { %234 = vmatprep.mubr.f32.mxu1 %v233_v13 }
  0x94   :  { %240 = vmatmul.mubr.f32.gmra.mrb[2].mxu1 %v239_v16  ;;  %578 = vmatmul.mubr.f32.gmra.mrb[4].mxu0 %v252_v9  ;;  %v267_v20 = vand.u32 4294901760, %v266_v15  ;;  %v248_v21 = vand.u32 4294901760, %v247_v19  ;;  %v261_v22 = vand.u32 4294901760, %v260_v18  ;;  %v254_v23 = vand.u32 4294901760, %v253_v17 }
  0x96   :  { %v268_v24 = vsub.f32 %v266_v15, %v267_v20  ;;  %249 = vmatprep.mubr.f32.mxu1 %v248_v21  ;;  %585 = vmatprep.mubr.f32.mxu0 %v261_v22  ;;  %v262_v25 = vsub.f32 %v260_v18, %v261_v22 }
  0x98   :  { %255 = vmatmul.mubr.f32.gmra.mrb[4].mxu1 %v254_v23  ;;  %589 = vmatmul.mubr.f32.gmra.mrb[6].mxu0 %v267_v20  ;;  %v263_v14 = vand.u32 4294901760, %v262_v25  ;;  %v269_v26 = vand.u32 4294901760, %v268_v24 }
  0x99   :  { %665 = vmatprep.mubr.f32.mxu0 %v1003_v39 }
  0x9a   :  { %264 = vmatprep.mubr.f32.mxu1 %v263_v14 }
  0x9c   :  { %270 = vmatmul.mubr.f32.gmra.mrb[6].mxu1 %v269_v26  ;;  %667 = vmatmul.mubr.f32.vlgmr.msra.gmra.mrb[0].mxu0 %v1001_v38 }
  0x9d   :  { %350 = vmatprep.mubr.f32.mxu1 %v1003_v39  ;;  %672 = vmatprep.mubr.f32.mxu0 %v1016_v48 }
  0x9e   :  { %696 = vmatpush1.xpose.msra.mxu0 %v938_v12 }
  0xa0   :  { %352 = vmatmul.mubr.f32.vlgmr.msra.gmra.mrb[0].mxu1 %v1001_v38  ;;  %674 = vmatmul.mubr.f32.gmra.mrb[2].mxu0 %v1013_v46 }
  0xa1   :  { %383 = vmatpush1.xpose.msra.mxu1 %v998_v34  ;;  %357 = vmatprep.mubr.f32.mxu1 %v1016_v48 }
  0xa2   :  { %679 = vmatprep.mubr.f32.mxu0 %v1032_v60 }
  0xa4   :  { %359 = vmatmul.mubr.f32.gmra.mrb[2].mxu1 %v1013_v46  ;;  %681 = vmatmul.mubr.f32.gmra.mrb[4].mxu0 %v1029_v58 }
  0xa5   :  { %364 = vmatprep.mubr.f32.mxu1 %v1032_v60  ;;  %686 = vmatprep.mubr.f32.mxu0 %v259_v10 }
  0xa8   :  { %366 = vmatmul.mubr.f32.gmra.mrb[4].mxu1 %v1029_v58  ;;  %688 = vmatmul.mubr.f32.gmra.mrb[6].mxu0 %v265_v8 }
  0xa9   :  { %371 = vmatprep.mubr.f32.mxu1 %v259_v10  ;;  %760 = vmatprep.mubr.f32.mxu0 %v1003_v39 }
  0xac   :  { %373 = vmatmul.mubr.f32.gmra.mrb[6].mxu1 %v265_v8  ;;  %762 = vmatmul.mubr.f32.vlgmr.msra.gmra.mrb[0].mxu0 %v1001_v38 }
  0xad   :  { %448 = vmatprep.mubr.f32.mxu1 %v1010_v42  ;;  %767 = vmatprep.mubr.f32.mxu0 %v1016_v48 }
  0xb0   :  { %451 = vmatmul.mubr.f32.vlgmr.msra.gmra.mrb[0].mxu1 %v1007_v41  ;;  %769 = vmatmul.mubr.f32.gmra.mrb[2].mxu0 %v1013_v46 }
  0xb1   :  { %457 = vmatprep.mubr.f32.mxu1 %v1025_v53  ;;  %774 = vmatprep.mubr.f32.mxu0 %v1032_v60 }
  0xb4   :  { %460 = vmatmul.mubr.f32.gmra.mrb[2].mxu1 %v1021_v51  ;;  %776 = vmatmul.mubr.f32.gmra.mrb[4].mxu0 %v1029_v58 }
  0xb5   :  { %466 = vmatprep.mubr.f32.mxu1 %v1041_v3  ;;  %781 = vmatprep.mubr.f32.mxu0 %v259_v10 }
  0xb7   :  { %v42_v12 = vpop.permute.xlu0 %41 }
  0xb8   :  { %469 = vmatmul.mubr.f32.gmra.mrb[4].mxu1 %v1036_v0  ;;  %783 = vmatmul.mubr.f32.gmra.mrb[6].mxu0 %v265_v8 }
  0xb9   :  { %475 = vmatprep.mubr.f32.mxu1 %v260_v18 }
  0xbb   :  { %v47_v29 = vpop.permute.xlu0 %46 }
  0xbc   :  { %478 = vmatmul.mubr.f32.gmra.mrb[6].mxu1 %v266_v15 }
  0xbf   :  { %v52_v42 = vpop.permute.xlu0 %51 }
  0xdd   :  { %v57_v50 = vpop.permute.xlu1 %56 }
 0x17f   :  { %v763_v27 = vpop.f32.mrb[0].mxu0 }
 0x180   :  { %v765_v28 = vpop.f32.mrb[1].mxu0 }
 0x183   :  { %v452_v30 = vpop.f32.mrb[0].mxu1  ;;  %v770_v31 = vpop.f32.mrb[2].mxu0 }
 0x184   :  { %v827_v32 = vadd.f32 %v452_v30, %v42_v12  ;;  %v454_v33 = vpop.f32.mrb[1].mxu1  ;;  %v772_v34 = vpop.f32.mrb[3].mxu0 }
 0x186   :  { %v828_v35 = vadd.f32 %v827_v32, %v763_v27 }
 0x187   :  { %v461_v36 = vpop.f32.mrb[2].mxu1  ;;  %v777_v37 = vpop.f32.mrb[4].mxu0 }
 0x188   :  { %v823_v38 = vmul.f32 -1.442695, %v828_v35  ;;  %v829_v39 = vadd.f32 %v461_v36, %v47_v29  ;;  %v463_v40 = vpop.f32.mrb[3].mxu1  ;;  %v779_v41 = vpop.f32.mrb[5].mxu0 }
 0x18a   :  { %871 = vpow2.f32 %v823_v38  ;;  %v830_v43 = vadd.f32 %v829_v39, %v770_v31 }
 0x18b   :  { %v470_v44 = vpop.f32.mrb[4].mxu1  ;;  %v784_v45 = vpop.f32.mrb[6].mxu0 }
 0x18c   :  { %v824_v46 = vmul.f32 -1.442695, %v830_v43  ;;  %v831_v47 = vadd.f32 %v470_v44, %v52_v42  ;;  %v472_v48 = vpop.f32.mrb[5].mxu1  ;;  %v786_v49 = vpop.f32.mrb[7].mxu0 }
 0x18e   :  { %873 = vpow2.f32 %v824_v46  ;;  %v832_v51 = vadd.f32 %v831_v47, %v777_v37 }
 0x18f   :  { %v479_v52 = vpop.f32.mrb[6].mxu1 }
 0x190   :  { %v825_v53 = vmul.f32 -1.442695, %v832_v51  ;;  %v833_v54 = vadd.f32 %v479_v52, %v57_v50  ;;  %v481_v55 = vpop.f32.mrb[7].mxu1 }
 0x192   :  { %875 = vpow2.f32 %v825_v53  ;;  %v834_v56 = vadd.f32 %v833_v54, %v784_v45 }
 0x194   :  { %v872_v57 = vpop.eup %871  ;;  %v826_v58 = vmul.f32 -1.442695, %v834_v56 }
 0x195   :  { %v800_v59 = vadd.f32 1.0, %v872_v57 }
 0x196   :  { %877 = vpow2.f32 %v826_v58 }
 0x197   :  { %879 = vrcp.f32 %v800_v59 }
 0x198   :  { %v874_v60 = vpop.eup %873 }
 0x199   :  { %v801_v61 = vadd.f32 1.0, %v874_v60 }
 0x19b   :  { %881 = vrcp.f32 %v801_v61 }
 0x19c   :  { %v876_v62 = vpop.eup %875 }
 0x19d   :  { %v802_v63 = vadd.f32 1.0, %v876_v62 }
 0x19f   :  { %883 = vrcp.f32 %v802_v63 }
 0x1a0   :  { %v878_v0 = vpop.eup %877 }
 0x1a1   :  { %v880_v1 = vpop.eup %879  ;;  %v803_v2 = vadd.f32 1.0, %v878_v0 }
 0x1a2   :  { %813 = vst.msk [vmem:[%s1091_s3] sm:$0xff] %vm812_vm1, %v880_v1 }
 0x1a3   :  { %885 = vrcp.f32 %v803_v2 }
 0x1a5   :  { %v882_v3 = vpop.eup %881 }
 0x1a6   :  { %814 = vst.msk [vmem:[%s1091_s3 + $0x8] sm:$0xff] %vm812_vm1, %v882_v3 }
 0x1a9   :  { %v884_v4 = vpop.eup %883 }
 0x1aa   :  { %815 = vst.msk [vmem:[%s1091_s3 + $0x10] sm:$0xff] %vm812_vm1, %v884_v4 }
 0x1ad   :  { %v886_v5 = vpop.eup %885 }
 0x1ae   :  { %817 = vst.msk [vmem:[%s1091_s3 + $0x18] sm:$0x3f] %vm816_vm2, %v886_v5 }

</bundles_post_ra>
